<compile_context>
chip_gen: v6e
topology: v6e:2x2x1
jax: 0.10.0
libtpu: 0.0.40
codegen_flags: <defaults>
</compile_context>

<pallas_src>
import functools

import jax
import jax.numpy as jnp
from jax.experimental import pallas as pl
from jax.experimental.pallas import tpu as pltpu


# ----------------------------------------------------------------------------
# Pallas kernel: GraphGRU (depth iterations) + node aggregation + outputNN +
# per-tree mean pooling.  All feature dims are padded to the 128-lane width.
# ----------------------------------------------------------------------------
def jtnn_encoder_kernel(mess_g_ref, node_g_ref, x_ref, fnode_ref, scope_ref,
                        w_x3_ref, b3_ref, ur_ref, wz_h_ref, wh_h_ref,
                        wo_ref, bo_ref, out_ref,
                        *, depth, max_nei, hp, use_gather):
    f32, bf16 = jnp.float32, jnp.bfloat16
    Hp = hp
    x = x_ref[...]                                   # (M, Hp) bf16 message feats
    M = x.shape[0]
    N = fnode_ref.shape[0]

    # --- depth-invariant, fused x-side pre-activations: [xz | xr | xh] -------
    x3 = jnp.dot(x, w_x3_ref[...], preferred_element_type=f32) + b3_ref[...]
    xz, xr, xh = x3[:, :Hp], x3[:, Hp:2 * Hp], x3[:, 2 * Hp:]

    # message row 0 is the padding message -> forced to zero every iteration.
    row_id = jax.lax.broadcasted_iota(jnp.int32, (M, 1), 0)
    mask = (row_id != 0).astype(f32)

    ur, wz_h, wh_h = ur_ref[...], wz_h_ref[...], wh_h_ref[...]

    def depth_body(_, h):                            # h: (M, Hp) f32 state
        # Ur matmul hoisted out of the neighbor loop (gather commutes with it).
        hU = jnp.dot(h.astype(bf16), ur, preferred_element_type=f32)
        zeros = jnp.zeros((M, Hp), f32)

        if use_gather:
            def nei_body(n, carry):
                sum_h, sum_g = carry
                idx = mess_g_ref[n][0]               # (M,) int32 neighbor ids
                h_nei = jnp.take(h, idx, axis=0, mode="clip")
                hU_nei = jnp.take(hU, idx, axis=0, mode="clip")
                r = jax.nn.sigmoid(xr + hU_nei)
                return sum_h + h_nei, sum_g + r * h_nei
        else:
            # one-hot MXU gather of [h | hU] with one matmul per neighbor.
            hcat = jnp.concatenate([h, hU], axis=1).astype(bf16)   # (M, 2Hp)

            def nei_body(n, carry):
                sum_h, sum_g = carry
                sel = jnp.dot(mess_g_ref[n], hcat, preferred_element_type=f32)
                h_nei, hU_nei = sel[:, :Hp], sel[:, Hp:]
                r = jax.nn.sigmoid(xr + hU_nei)
                return sum_h + h_nei, sum_g + r * h_nei

        sum_h, sum_g = jax.lax.fori_loop(0, max_nei, nei_body, (zeros, zeros),
                                         unroll=True)

        z = jax.nn.sigmoid(
            xz + jnp.dot(sum_h.astype(bf16), wz_h, preferred_element_type=f32))
        pre_h = jnp.tanh(
            xh + jnp.dot(sum_g.astype(bf16), wh_h, preferred_element_type=f32))
        return ((1.0 - z) * sum_h + z * pre_h) * mask

    h = jax.lax.fori_loop(0, depth, depth_body, jnp.zeros((M, Hp), f32))

    # --- node-side sum of incoming messages (gather-sum, no dense A) ---------
    if use_gather:
        def node_body(n, acc):
            idx = node_g_ref[n][0]                   # (N,) int32
            return acc + jnp.take(h, idx, axis=0, mode="clip")
        mess_sum = jax.lax.fori_loop(0, max_nei, node_body,
                                     jnp.zeros((N, Hp), f32), unroll=True)
    else:
        mess_sum = jnp.dot(node_g_ref[...], h.astype(bf16),
                           preferred_element_type=f32)

    # --- fused outputNN: relu([fnode | mess_sum] @ [Wo_x; Wo_h] + bo) --------
    fn_cat = jnp.concatenate([fnode_ref[...], mess_sum.astype(bf16)], axis=1)
    node_out = jnp.maximum(
        jnp.dot(fn_cat, wo_ref[...], preferred_element_type=f32) + bo_ref[...],
        0.0)

    # --- per-tree mean pooling (bf16 operands, f32 accumulation) -------------
    out_ref[...] = jnp.dot(scope_ref[...], node_out.astype(bf16),
                           preferred_element_type=f32)


# ----------------------------------------------------------------------------
# Wrapper: padding / dtype prep / index tables (or one-hot fallback) glue,
# one pallas_call.
# ----------------------------------------------------------------------------
def jtnn_encoder_forward(params, fnode, fmess, node_graph, mess_graph, scope,
                         *, depth, use_gather=True):
    f32, bf16 = jnp.float32, jnp.bfloat16
    H = params["embedding"].shape[1]
    Hp = ((H + 127) // 128) * 128                    # pad hidden to lane width
    M, max_nei = mess_graph.shape
    N = node_graph.shape[0]
    B = len(scope)

    # explicit OOB guard: in-kernel gathers clamp out-of-range indices silently.
    assert 0 <= int(jnp.min(mess_graph)) and int(jnp.max(mess_graph)) < M
    assert 0 <= int(jnp.min(node_graph)) and int(jnp.max(node_graph)) < M

    def pad_w(w):                                    # (h_in,h_out) -> (Hp,Hp) bf16
        return jnp.zeros((Hp, Hp), f32).at[:w.shape[0], :w.shape[1]].set(w).astype(bf16)

    def pad_b(b):                                    # (1,H) -> (1,Hp) f32
        return jnp.zeros((1, Hp), f32).at[:, :b.shape[1]].set(b)

    # glue: embedding lookup + fmess row select (pure index ops, stay in XLA).
    emb = jnp.zeros((params["embedding"].shape[0], Hp), f32)
    emb = emb.at[:, :H].set(params["embedding"])
    fnode_emb = emb[fnode]                           # (N, Hp) f32
    x = fnode_emb[fmess].astype(bf16)                # (M, Hp) bf16

    # fused depth-invariant x-side weights [Wz_x | Wr | Wh_x] + biases.
    w_x3 = jnp.concatenate(
        [pad_w(params["Wz"][:H]), pad_w(params["Wr"]), pad_w(params["Wh"][:H])],
        axis=1)                                      # (Hp, 3Hp) bf16
    b3 = jnp.concatenate(
        [pad_b(params["bz"]), pad_b(params["bUr"]), pad_b(params["bh"])],
        axis=1)                                      # (1, 3Hp) f32
    wz_h, wh_h = pad_w(params["Wz"][H:]), pad_w(params["Wh"][H:])
    ur = pad_w(params["Ur"])
    # fused outputNN weights [Wo_x; Wo_h] -> native 2*Hp (=256) contraction.
    wo = jnp.concatenate([pad_w(params["Wo"][:H]), pad_w(params["Wo"][H:])],
                         axis=0)                     # (2Hp, Hp) bf16
    bo = pad_b(params["bo"])

    # scope mean-pooling matrix (static Python scope list); guard le == 0.
    scope_rows = []
    for st, le in scope:
        row = jnp.zeros((N,), f32).at[st:st + le].set(1.0 / max(le, 1))
        scope_rows.append(row)
    scope_mat = jnp.stack(scope_rows, axis=0).astype(bf16)      # (B, N) bf16

    if use_gather:
        # flat int32 neighbor-index tables for in-kernel sublane row gathers.
        mess_tbl = jnp.transpose(mess_graph.astype(jnp.int32))[:, None, :]   # (max_nei,1,M)
        node_tbl = jnp.transpose(node_graph.astype(jnp.int32))[:, None, :]   # (max_nei,1,N)
    else:
        # quadratic one-hot fallback: gated to small M (O(max_nei*M^2) VMEM).
        assert max_nei * M * M * 2 <= (16 << 20), \
            "one-hot fallback only supported for small graphs"
        mess_tbl = jnp.stack(
            [jax.nn.one_hot(mess_graph[:, n], M, dtype=f32)
             for n in range(max_nei)], axis=0).astype(bf16)     # (max_nei, M, M)
        node_tbl = sum(jax.nn.one_hot(node_graph[:, n], M, dtype=f32)
                       for n in range(max_nei)).astype(bf16)    # (N, M)

    inputs = (mess_tbl, node_tbl, x, fnode_emb.astype(bf16), scope_mat,
              w_x3, b3, ur, wz_h, wh_h, wo, bo)

    kernel = functools.partial(jtnn_encoder_kernel, depth=depth,
                               max_nei=max_nei, hp=Hp, use_gather=use_gather)

    # VMEM budget: generation-aware cap, intermediate-aware demand.
    in_bytes = sum(int(a.size) * a.dtype.itemsize for a in inputs)
    out_bytes = B * Hp * 4
    # live intermediates: h, hU, sum_h, sum_g, x3(=3*Hp), neighbor slabs,
    # mess_sum, fn_cat, node_out.
    interm_bytes = (10 * M * Hp + 5 * N * Hp + 2 * B * Hp) * 4
    try:
        phys_vmem = int(getattr(pltpu.get_tpu_info(), "vmem_capacity_bytes",
                                64 << 20))
    except Exception:
        phys_vmem = 64 << 20
    cap = (phys_vmem * 7) // 8                       # ~56 MiB v7x, ~112 MiB v5e/v6e
    need = in_bytes + out_bytes + interm_bytes + (4 << 20)
    vmem_limit = int(min(cap, max(32 << 20, need)))

    vmem = pl.BlockSpec(memory_space=pltpu.MemorySpace.VMEM)
    out = pl.pallas_call(
        kernel,
        out_shape=jax.ShapeDtypeStruct((B, Hp), jnp.float32),
        in_specs=[vmem] * len(inputs),
        out_specs=vmem,
        compiler_params=pltpu.CompilerParams(vmem_limit_bytes=vmem_limit),
    )(*inputs)
    return out[:, :H]                                # drop lane padding


# ----------------------------------------------------------------------------
# Pure-JAX reference replicating the PyTorch forward semantics exactly (f32).
# ----------------------------------------------------------------------------
def jtnn_encoder_reference(params, fnode, fmess, node_graph, mess_graph, scope,
                           *, depth):
    emb = params["embedding"][fnode]                 # (N, H)
    x = emb[fmess]                                   # (M, H)
    M = mess_graph.shape[0]
    H = x.shape[1]
    h = jnp.zeros((M, H), jnp.float32)
    mask = jnp.ones((M, 1), jnp.float32).at[0].set(0.0)

    for _ in range(depth):
        h_nei = h[mess_graph]                        # (M, max_nei, H)
        sum_h = h_nei.sum(axis=1)
        z = jax.nn.sigmoid(
            jnp.concatenate([x, sum_h], axis=1) @ params["Wz"] + params["bz"])
        r1 = (x @ params["Wr"])[:, None, :]
        r2 = h_nei @ params["Ur"] + params["bUr"]
        r = jax.nn.sigmoid(r1 + r2)
        sum_gated = (r * h_nei).sum(axis=1)
        pre_h = jnp.tanh(
            jnp.concatenate([x, sum_gated], axis=1) @ params["Wh"] + params["bh"])
        h = (1.0 - z) * sum_h + z * pre_h
        h = h * mask

    mess_nei = h[node_graph].sum(axis=1)             # (N, H)
    node_out = jax.nn.relu(
        jnp.concatenate([emb, mess_nei], axis=1) @ params["Wo"] + params["bo"])
    outs = [node_out[st:st + le].mean(axis=0) for st, le in scope]
    return jnp.stack(outs, axis=0)


if __name__ == "__main__":
    # Small, module-consistent sizes.
    vocab_size, hidden_size, depth = 20, 32, 3
    num_nodes, num_mess, max_nei = 8, 16, 4
    scope = [(0, 5), (5, 3)]                         # two trees over 8 nodes

    key = jax.random.PRNGKey(0)
    keys = jax.random.split(key, 16)

    params = {
        "embedding": 0.1 * jax.random.normal(keys[0], (vocab_size, hidden_size)),
        "Wz": 0.1 * jax.random.normal(keys[1], (2 * hidden_size, hidden_size)),
        "bz": 0.05 * jax.random.normal(keys[2], (1, hidden_size)),
        "Wr": 0.1 * jax.random.normal(keys[3], (hidden_size, hidden_size)),
        "Ur": 0.1 * jax.random.normal(keys[4], (hidden_size, hidden_size)),
        "bUr": 0.05 * jax.random.normal(keys[5], (1, hidden_size)),
        "Wh": 0.1 * jax.random.normal(keys[6], (2 * hidden_size, hidden_size)),
        "bh": 0.05 * jax.random.normal(keys[7], (1, hidden_size)),
        "Wo": 0.1 * jax.random.normal(keys[8], (2 * hidden_size, hidden_size)),
        "bo": 0.05 * jax.random.normal(keys[9], (1, hidden_size)),
    }
    params = {k: v.astype(jnp.float32) for k, v in params.items()}

    fnode = jax.random.randint(keys[10], (num_nodes,), 0, vocab_size)
    fmess = jax.random.randint(keys[11], (num_mess,), 0, num_nodes)
    fmess = fmess.at[0].set(0)                       # padding message
    mess_graph = jax.random.randint(keys[12], (num_mess, max_nei), 0, num_mess)
    mess_graph = mess_graph.at[0].set(0)             # padding row
    node_graph = jax.random.randint(keys[13], (num_nodes, max_nei), 0, num_mess)

    ref = jax.block_until_ready(jtnn_encoder_reference(
        params, fnode, fmess, node_graph, mess_graph, scope, depth=depth))

    def run(use_gather):
        out = jtnn_encoder_forward(params, fnode, fmess, node_graph, mess_graph,
                                   scope, depth=depth, use_gather=use_gather)
        return jax.block_until_ready(out)

    # bf16 MXU operands -> tolerance loosened vs. the f32 reference.
    RTOL = ATOL = 2e-2

    out = None
    try:
        cand = run(use_gather=True)                  # direct-gather kernel
        if bool(jnp.allclose(cand, ref, rtol=RTOL, atol=ATOL)):
            out = cand
    except Exception:
        out = None                                   # gather not lowerable here
    if out is None:
        out = run(use_gather=False)                  # one-hot MXU-gather fallback

    assert out.shape == (len(scope), hidden_size)
    if not jnp.allclose(out, ref, rtol=RTOL, atol=ATOL):
        raise AssertionError(f"mismatch: max err {jnp.max(jnp.abs(out - ref))}")

    print("KERNEL_OK")
</pallas_src>

<mosaic_0001>
module attributes {stable_mosaic.version = 11 : i64} {
  func.func @jtnn_encoder_kernel(%arg0: memref<4x16x16xbf16, #tpu.memory_space<vmem>>, %arg1: memref<8x16xbf16, #tpu.memory_space<vmem>>, %arg2: memref<16x128xbf16, #tpu.memory_space<vmem>>, %arg3: memref<8x128xbf16, #tpu.memory_space<vmem>>, %arg4: memref<2x8xbf16, #tpu.memory_space<vmem>>, %arg5: memref<128x384xbf16, #tpu.memory_space<vmem>>, %arg6: memref<1x384xf32, #tpu.memory_space<vmem>>, %arg7: memref<128x128xbf16, #tpu.memory_space<vmem>>, %arg8: memref<128x128xbf16, #tpu.memory_space<vmem>>, %arg9: memref<128x128xbf16, #tpu.memory_space<vmem>>, %arg10: memref<256x128xbf16, #tpu.memory_space<vmem>>, %arg11: memref<1x128xf32, #tpu.memory_space<vmem>>, %arg12: memref<2x128xf32, #tpu.memory_space<vmem>>) attributes {dimension_semantics = [], scalar_prefetch = 0 : i64, scratch_operands = 0 : i64, tpu.core_type = #tpu.core_type<tc>} {
    %c0 = arith.constant 0 : index
    %c0_0 = arith.constant 0 : index
    %0 = vector.load %arg2[%c0, %c0_0] : memref<16x128xbf16, #tpu.memory_space<vmem>>, vector<16x128xbf16>
    %c0_1 = arith.constant 0 : index
    %c0_2 = arith.constant 0 : index
    %1 = vector.load %arg5[%c0_1, %c0_2] : memref<128x384xbf16, #tpu.memory_space<vmem>>, vector<128x384xbf16>
    %cst = arith.constant dense<0.000000e+00> : vector<16x384xf32>
    %2 = tpu.matmul %0, %1, %cst {dimension_numbers = #tpu.dot_dimension_numbers<[1], [0], [0], [1], [0, 0, 1, 1], [], []>} : vector<16x128xbf16>, vector<128x384xbf16>, vector<16x384xf32> -> vector<16x384xf32>
    %c0_3 = arith.constant 0 : index
    %c0_4 = arith.constant 0 : index
    %3 = vector.load %arg6[%c0_3, %c0_4] : memref<1x384xf32, #tpu.memory_space<vmem>>, vector<1x384xf32>
    %4 = vector.broadcast %3 : vector<1x384xf32> to vector<16x384xf32>
    %5 = arith.addf %2, %4 : vector<16x384xf32>
    %6 = vector.extract_strided_slice %5 {offsets = [0, 0], sizes = [16, 128], strides = [1, 1]} : vector<16x384xf32> to vector<16x128xf32>
    %7 = vector.extract_strided_slice %5 {offsets = [0, 128], sizes = [16, 128], strides = [1, 1]} : vector<16x384xf32> to vector<16x128xf32>
    %8 = vector.extract_strided_slice %5 {offsets = [0, 256], sizes = [16, 128], strides = [1, 1]} : vector<16x384xf32> to vector<16x128xf32>
    %9 = tpu.iota {dimensions = array<i32: 0>} : vector<16x1xi32>
    %c0_i32 = arith.constant 0 : i32
    %10 = vector.broadcast %c0_i32 : i32 to vector<16x1xi32>
    %11 = arith.cmpi ne, %9, %10 : vector<16x1xi32>
    %12 = arith.extui %11 : vector<16x1xi1> to vector<16x1xi32>
    %13 = arith.sitofp %12 : vector<16x1xi32> to vector<16x1xf32>
    %c0_5 = arith.constant 0 : index
    %c0_6 = arith.constant 0 : index
    %14 = vector.load %arg7[%c0_5, %c0_6] : memref<128x128xbf16, #tpu.memory_space<vmem>>, vector<128x128xbf16>
    %c0_7 = arith.constant 0 : index
    %c0_8 = arith.constant 0 : index
    %15 = vector.load %arg8[%c0_7, %c0_8] : memref<128x128xbf16, #tpu.memory_space<vmem>>, vector<128x128xbf16>
    %c0_9 = arith.constant 0 : index
    %c0_10 = arith.constant 0 : index
    %16 = vector.load %arg9[%c0_9, %c0_10] : memref<128x128xbf16, #tpu.memory_space<vmem>>, vector<128x128xbf16>
    %cst_11 = arith.constant 0.000000e+00 : f32
    %17 = vector.broadcast %cst_11 : f32 to vector<16x128xf32>
    %c0_i32_12 = arith.constant 0 : i32
    %c3_i32 = arith.constant 3 : i32
    %18 = arith.addi %c0_i32_12, %c3_i32 : i32
    %c1_i32 = arith.constant 1 : i32
    %19 = scf.for %arg13 = %c0_i32_12 to %18 step %c1_i32 iter_args(%arg14 = %17) -> (vector<16x128xf32>)  : i32 {
      %37 = arith.truncf %arg14 : vector<16x128xf32> to vector<16x128xbf16>
      %cst_29 = arith.constant dense<0.000000e+00> : vector<16x128xf32>
      %38 = tpu.matmul %37, %14, %cst_29 {dimension_numbers = #tpu.dot_dimension_numbers<[1], [0], [0], [1], [0, 0, 1, 1], [], []>} : vector<16x128xbf16>, vector<128x128xbf16>, vector<16x128xf32> -> vector<16x128xf32>
      %cst_30 = arith.constant 0.000000e+00 : f32
      %39 = vector.broadcast %cst_30 : f32 to vector<16x128xf32>
      %40 = tpu.concatenate %arg14, %38 in 1 : vector<16x128xf32>, vector<16x128xf32> -> vector<16x256xf32>
      %41 = arith.truncf %40 : vector<16x256xf32> to vector<16x256xbf16>
      %c0_i32_31 = arith.constant 0 : i32
      %42 = arith.index_cast %c0_i32_31 : i32 to index
      %c0_32 = arith.constant 0 : index
      %c0_33 = arith.constant 0 : index
      %43 = vector.load %arg0[%42, %c0_32, %c0_33] : memref<4x16x16xbf16, #tpu.memory_space<vmem>>, vector<1x16x16xbf16>
      %44 = vector.shape_cast %43 : vector<1x16x16xbf16> to vector<16x16xbf16>
      %cst_34 = arith.constant dense<0.000000e+00> : vector<16x256xf32>
      %45 = tpu.matmul %44, %41, %cst_34 {dimension_numbers = #tpu.dot_dimension_numbers<[1], [0], [0], [1], [0, 0, 1, 1], [], []>} : vector<16x16xbf16>, vector<16x256xbf16>, vector<16x256xf32> -> vector<16x256xf32>
      %46 = vector.extract_strided_slice %45 {offsets = [0, 0], sizes = [16, 128], strides = [1, 1]} : vector<16x256xf32> to vector<16x128xf32>
      %47 = vector.extract_strided_slice %45 {offsets = [0, 128], sizes = [16, 128], strides = [1, 1]} : vector<16x256xf32> to vector<16x128xf32>
      %48 = arith.addf %7, %47 : vector<16x128xf32>
      %49 = arith.negf %48 : vector<16x128xf32>
      %50 = math.exp %49 : vector<16x128xf32>
      %cst_35 = arith.constant 1.000000e+00 : f32
      %51 = vector.broadcast %cst_35 : f32 to vector<16x128xf32>
      %52 = arith.addf %51, %50 : vector<16x128xf32>
      %53 = arith.divf %51, %52 : vector<16x128xf32>
      %54 = arith.addf %39, %46 : vector<16x128xf32>
      %55 = arith.mulf %53, %46 : vector<16x128xf32>
      %56 = arith.addf %39, %55 : vector<16x128xf32>
      %c1_i32_36 = arith.constant 1 : i32
      %57 = arith.index_cast %c1_i32_36 : i32 to index
      %c0_37 = arith.constant 0 : index
      %c0_38 = arith.constant 0 : index
      %58 = vector.load %arg0[%57, %c0_37, %c0_38] : memref<4x16x16xbf16, #tpu.memory_space<vmem>>, vector<1x16x16xbf16>
      %59 = vector.shape_cast %58 : vector<1x16x16xbf16> to vector<16x16xbf16>
      %cst_39 = arith.constant dense<0.000000e+00> : vector<16x256xf32>
      %60 = tpu.matmul %59, %41, %cst_39 {dimension_numbers = #tpu.dot_dimension_numbers<[1], [0], [0], [1], [0, 0, 1, 1], [], []>} : vector<16x16xbf16>, vector<16x256xbf16>, vector<16x256xf32> -> vector<16x256xf32>
      %61 = vector.extract_strided_slice %60 {offsets = [0, 0], sizes = [16, 128], strides = [1, 1]} : vector<16x256xf32> to vector<16x128xf32>
      %62 = vector.extract_strided_slice %60 {offsets = [0, 128], sizes = [16, 128], strides = [1, 1]} : vector<16x256xf32> to vector<16x128xf32>
      %63 = arith.addf %7, %62 : vector<16x128xf32>
      %64 = arith.negf %63 : vector<16x128xf32>
      %65 = math.exp %64 : vector<16x128xf32>
      %cst_40 = arith.constant 1.000000e+00 : f32
      %66 = vector.broadcast %cst_40 : f32 to vector<16x128xf32>
      %67 = arith.addf %66, %65 : vector<16x128xf32>
      %68 = arith.divf %66, %67 : vector<16x128xf32>
      %69 = arith.addf %54, %61 : vector<16x128xf32>
      %70 = arith.mulf %68, %61 : vector<16x128xf32>
      %71 = arith.addf %56, %70 : vector<16x128xf32>
      %c2_i32 = arith.constant 2 : i32
      %72 = arith.index_cast %c2_i32 : i32 to index
      %c0_41 = arith.constant 0 : index
      %c0_42 = arith.constant 0 : index
      %73 = vector.load %arg0[%72, %c0_41, %c0_42] : memref<4x16x16xbf16, #tpu.memory_space<vmem>>, vector<1x16x16xbf16>
      %74 = vector.shape_cast %73 : vector<1x16x16xbf16> to vector<16x16xbf16>
      %cst_43 = arith.constant dense<0.000000e+00> : vector<16x256xf32>
      %75 = tpu.matmul %74, %41, %cst_43 {dimension_numbers = #tpu.dot_dimension_numbers<[1], [0], [0], [1], [0, 0, 1, 1], [], []>} : vector<16x16xbf16>, vector<16x256xbf16>, vector<16x256xf32> -> vector<16x256xf32>
      %76 = vector.extract_strided_slice %75 {offsets = [0, 0], sizes = [16, 128], strides = [1, 1]} : vector<16x256xf32> to vector<16x128xf32>
      %77 = vector.extract_strided_slice %75 {offsets = [0, 128], sizes = [16, 128], strides = [1, 1]} : vector<16x256xf32> to vector<16x128xf32>
      %78 = arith.addf %7, %77 : vector<16x128xf32>
      %79 = arith.negf %78 : vector<16x128xf32>
      %80 = math.exp %79 : vector<16x128xf32>
      %cst_44 = arith.constant 1.000000e+00 : f32
      %81 = vector.broadcast %cst_44 : f32 to vector<16x128xf32>
      %82 = arith.addf %81, %80 : vector<16x128xf32>
      %83 = arith.divf %81, %82 : vector<16x128xf32>
      %84 = arith.addf %69, %76 : vector<16x128xf32>
      %85 = arith.mulf %83, %76 : vector<16x128xf32>
      %86 = arith.addf %71, %85 : vector<16x128xf32>
      %c3_i32_45 = arith.constant 3 : i32
      %87 = arith.index_cast %c3_i32_45 : i32 to index
      %c0_46 = arith.constant 0 : index
      %c0_47 = arith.constant 0 : index
      %88 = vector.load %arg0[%87, %c0_46, %c0_47] : memref<4x16x16xbf16, #tpu.memory_space<vmem>>, vector<1x16x16xbf16>
      %89 = vector.shape_cast %88 : vector<1x16x16xbf16> to vector<16x16xbf16>
      %cst_48 = arith.constant dense<0.000000e+00> : vector<16x256xf32>
      %90 = tpu.matmul %89, %41, %cst_48 {dimension_numbers = #tpu.dot_dimension_numbers<[1], [0], [0], [1], [0, 0, 1, 1], [], []>} : vector<16x16xbf16>, vector<16x256xbf16>, vector<16x256xf32> -> vector<16x256xf32>
      %91 = vector.extract_strided_slice %90 {offsets = [0, 0], sizes = [16, 128], strides = [1, 1]} : vector<16x256xf32> to vector<16x128xf32>
      %92 = vector.extract_strided_slice %90 {offsets = [0, 128], sizes = [16, 128], strides = [1, 1]} : vector<16x256xf32> to vector<16x128xf32>
      %93 = arith.addf %7, %92 : vector<16x128xf32>
      %94 = arith.negf %93 : vector<16x128xf32>
      %95 = math.exp %94 : vector<16x128xf32>
      %cst_49 = arith.constant 1.000000e+00 : f32
      %96 = vector.broadcast %cst_49 : f32 to vector<16x128xf32>
      %97 = arith.addf %96, %95 : vector<16x128xf32>
      %98 = arith.divf %96, %97 : vector<16x128xf32>
      %99 = arith.addf %84, %91 : vector<16x128xf32>
      %100 = arith.mulf %98, %91 : vector<16x128xf32>
      %101 = arith.addf %86, %100 : vector<16x128xf32>
      %c4_i32 = arith.constant 4 : i32
      %102 = arith.truncf %99 : vector<16x128xf32> to vector<16x128xbf16>
      %cst_50 = arith.constant dense<0.000000e+00> : vector<16x128xf32>
      %103 = tpu.matmul %102, %15, %cst_50 {dimension_numbers = #tpu.dot_dimension_numbers<[1], [0], [0], [1], [0, 0, 1, 1], [], []>} : vector<16x128xbf16>, vector<128x128xbf16>, vector<16x128xf32> -> vector<16x128xf32>
      %104 = arith.addf %6, %103 : vector<16x128xf32>
      %105 = arith.negf %104 : vector<16x128xf32>
      %106 = math.exp %105 : vector<16x128xf32>
      %cst_51 = arith.constant 1.000000e+00 : f32
      %107 = vector.broadcast %cst_51 : f32 to vector<16x128xf32>
      %108 = arith.addf %107, %106 : vector<16x128xf32>
      %109 = arith.divf %107, %108 : vector<16x128xf32>
      %110 = arith.truncf %101 : vector<16x128xf32> to vector<16x128xbf16>
      %cst_52 = arith.constant dense<0.000000e+00> : vector<16x128xf32>
      %111 = tpu.matmul %110, %16, %cst_52 {dimension_numbers = #tpu.dot_dimension_numbers<[1], [0], [0], [1], [0, 0, 1, 1], [], []>} : vector<16x128xbf16>, vector<128x128xbf16>, vector<16x128xf32> -> vector<16x128xf32>
      %112 = arith.addf %8, %111 : vector<16x128xf32>
      %113 = math.tanh %112 : vector<16x128xf32>
      %cst_53 = arith.constant 1.000000e+00 : f32
      %114 = vector.broadcast %cst_53 : f32 to vector<16x128xf32>
      %115 = arith.subf %114, %109 : vector<16x128xf32>
      %116 = arith.mulf %115, %99 : vector<16x128xf32>
      %117 = arith.mulf %109, %113 : vector<16x128xf32>
      %118 = arith.addf %116, %117 : vector<16x128xf32>
      %119 = vector.broadcast %13 : vector<16x1xf32> to vector<16x128xf32>
      %120 = arith.mulf %118, %119 : vector<16x128xf32>
      scf.yield %120 : vector<16x128xf32>
    }
    %c0_13 = arith.constant 0 : index
    %c0_14 = arith.constant 0 : index
    %20 = vector.load %arg1[%c0_13, %c0_14] : memref<8x16xbf16, #tpu.memory_space<vmem>>, vector<8x16xbf16>
    %21 = arith.truncf %19 : vector<16x128xf32> to vector<16x128xbf16>
    %cst_15 = arith.constant dense<0.000000e+00> : vector<8x128xf32>
    %22 = tpu.matmul %20, %21, %cst_15 {dimension_numbers = #tpu.dot_dimension_numbers<[1], [0], [0], [1], [0, 0, 1, 1], [], []>} : vector<8x16xbf16>, vector<16x128xbf16>, vector<8x128xf32> -> vector<8x128xf32>
    %c0_16 = arith.constant 0 : index
    %c0_17 = arith.constant 0 : index
    %23 = vector.load %arg3[%c0_16, %c0_17] : memref<8x128xbf16, #tpu.memory_space<vmem>>, vector<8x128xbf16>
    %24 = arith.truncf %22 : vector<8x128xf32> to vector<8x128xbf16>
    %25 = tpu.concatenate %23, %24 in 1 : vector<8x128xbf16>, vector<8x128xbf16> -> vector<8x256xbf16>
    %c0_18 = arith.constant 0 : index
    %c0_19 = arith.constant 0 : index
    %26 = vector.load %arg10[%c0_18, %c0_19] : memref<256x128xbf16, #tpu.memory_space<vmem>>, vector<256x128xbf16>
    %cst_20 = arith.constant dense<0.000000e+00> : vector<8x128xf32>
    %27 = tpu.matmul %25, %26, %cst_20 {dimension_numbers = #tpu.dot_dimension_numbers<[1], [0], [0], [1], [0, 0, 1, 1], [], []>} : vector<8x256xbf16>, vector<256x128xbf16>, vector<8x128xf32> -> vector<8x128xf32>
    %c0_21 = arith.constant 0 : index
    %c0_22 = arith.constant 0 : index
    %28 = vector.load %arg11[%c0_21, %c0_22] : memref<1x128xf32, #tpu.memory_space<vmem>>, vector<1x128xf32>
    %29 = vector.broadcast %28 : vector<1x128xf32> to vector<8x128xf32>
    %30 = arith.addf %27, %29 : vector<8x128xf32>
    %cst_23 = arith.constant 0.000000e+00 : f32
    %31 = vector.broadcast %cst_23 : f32 to vector<8x128xf32>
    %32 = arith.maximumf %30, %31 : vector<8x128xf32>
    %c0_24 = arith.constant 0 : index
    %c0_25 = arith.constant 0 : index
    %33 = vector.load %arg4[%c0_24, %c0_25] : memref<2x8xbf16, #tpu.memory_space<vmem>>, vector<2x8xbf16>
    %34 = arith.truncf %32 : vector<8x128xf32> to vector<8x128xbf16>
    %cst_26 = arith.constant dense<0.000000e+00> : vector<2x128xf32>
    %35 = tpu.matmul %33, %34, %cst_26 {dimension_numbers = #tpu.dot_dimension_numbers<[1], [0], [0], [1], [0, 0, 1, 1], [], []>} : vector<2x8xbf16>, vector<8x128xbf16>, vector<2x128xf32> -> vector<2x128xf32>
    %c0_27 = arith.constant 0 : index
    %c0_28 = arith.constant 0 : index
    %36 = vector.load %arg12[%c0_27, %c0_28] : memref<2x128xf32, #tpu.memory_space<vmem>>, vector<2x128xf32>
    tpu.vector_store %arg12[%c0_27, %c0_28], %35 {strides = array<i32>} : memref<2x128xf32, #tpu.memory_space<vmem>>, vector<2x128xf32>,
    return
  }
}

</mosaic_0001>

<bundles_post_ra>
// kernel: tpu_custom_call.1
= control target key start
LH: loop header
LB: loop body
LE: loop exit
PB: predicated region body
PF: predicated region fallthrough
CT: control target
= control target key end

     0   :  { %17 = vsyncpa [#allocation3], 0  ;;  %s2428_s0 = inlined_call_operand.hbm [shape: bf16[4,16,16], index: 0, kind: input, shape index: {}]   ;;  %s2429_s1 = inlined_call_operand.hbm [shape: bf16[8,16], index: 1, kind: input, shape index: {}]   ;;  %s2430_s2 = inlined_call_operand.hbm [shape: bf16[16,128], index: 2, kind: input, shape index: {}]   ;;  %s2431_s3 = inlined_call_operand.vmem [shape: bf16[8,128], index: 3, kind: input, shape index: {}]   ;;  %s2432_s4 = inlined_call_operand.hbm [shape: bf16[2,8], index: 4, kind: input, shape index: {}]   ;;  %s2433_s5 = inlined_call_operand.hbm [shape: bf16[128,384], index: 5, kind: input, shape index: {}]   ;;  %s2434_s6 = inlined_call_operand.vmem [shape: f32[1,384], index: 6, kind: input, shape index: {}]   ;;  %s2435_s7 = inlined_call_operand.hbm [shape: bf16[128,128], index: 7, kind: input, shape index: {}]   ;;  %s2436_s8 = inlined_call_operand.hbm [shape: bf16[128,128], index: 8, kind: input, shape index: {}]   ;;  %s2437_s9 = inlined_call_operand.hbm [shape: bf16[128,128], index: 9, kind: input, shape index: {}]   ;;  %s2438_s10 = inlined_call_operand.hbm [shape: bf16[256,128], index: 10, kind: input, shape index: {}]   ;;  %s2439_s11 = inlined_call_operand.vmem [shape: f32[1,128], index: 11, kind: input, shape index: {}]   ;;  %s2440_s12 = inlined_call_operand.hbm [shape: f32[2,128], index: 12, kind: output, shape index: {}]  }
   0x1   :  { %18 = vsyncpa [#allocation6], 0 }
   0x2   :  { %19 = vsyncpa [#allocation9], 0 }
   0x3   :  { %20 = vsyncpa [#allocation12], 0 }
   0x4   :  { %21 = vsyncpa [#allocation15], 0 }
   0x5   :  { %22 = vsyncpa [#allocation4], 0  ;;  %s2013_s21 = smov [#allocation5]   ;;  %s2014_s23 = smov [#allocation8]  }
   0x6   :  { %s41_s22 = sshll.u32 %s2013_s21, 4  ;;  %s65_s24 = sshll.u32 %s2014_s23, 4  ;;  %s42_s22 = int_to_ptr.vmem [resolvable:$true] %s41_s22  ;;  %s66_s24 = int_to_ptr.vmem [resolvable:$true] %s65_s24 }
   0x7   :  { %s1785_s25 = scalar_lea.vmem %s42_s22, 64  ;;  %p1790_p1 = scmp.lt.s32.totalorder %s42_s22, %s42_s22 }
   0x8   :  { %p1786_p0 = scmp.ne.s32.totalorder %s42_s22, %s1785_s25  ;;  %p1791_p2 = scmp.lt.s32.totalorder %s1785_s25, %s1785_s25 }
   0xa   :  { %p1792_p3 = por %p1791_p2, %p1790_p1 }
   0xc   :  { %p1793_p4 = pnand %p1792_p3, %p1786_p0 }
   0xe   :  { %1796 = shalt.err (!%p1793_p4)
}
   0xf   :  { %44 = dma.hbm_to_vmem [thread:$0]  %s2429_s1, 64, %s42_s22, [#allocation6]  }
  0x10   :  { %s1805_s28 = scalar_lea.vmem %s66_s24, 16  ;;  %s1809_s29 = scalar_lea.vmem %s66_s24, 32 }
  0x11   :  { %p1806_p5 = scmp.ne.s32.totalorder %s66_s24, %s1805_s28  ;;  %p1810_p6 = scmp.lt.s32.totalorder %s66_s24, %s66_s24 }
  0x12   :  { %p1811_p7 = scmp.lt.s32.totalorder %s1809_s29, %s1805_s28 }
  0x14   :  { %p1812_p8 = por %p1811_p7, %p1810_p6 }
  0x16   :  { %p1813_p9 = pnand %p1812_p8, %p1806_p5 }
  0x18   :  { %1816 = shalt.err (!%p1813_p9)
}
  0x19   :  { %68 = dma.hbm_to_vmem [thread:$0]  %s2432_s4, 16, %s66_s24, [#allocation9]  }
  0x1a   :  { %s2015_s14 = smov [#allocation11]   ;;  %s2016_s16 = smov [#allocation14]  }
  0x1b   :  { %s88_s15 = sshll.u32 %s2015_s14, 4  ;;  %s112_s17 = sshll.u32 %s2016_s16, 4  ;;  %s89_s15 = int_to_ptr.vmem [resolvable:$true] %s88_s15  ;;  %s113_s17 = int_to_ptr.vmem [resolvable:$true] %s112_s17 }
  0x1c   :  { %s1825_s18 = scalar_lea.vmem %s89_s15, 1024  ;;  %p1830_p11 = scmp.lt.s32.totalorder %s89_s15, %s89_s15 }
  0x1d   :  { %p1826_p10 = scmp.ne.s32.totalorder %s89_s15, %s1825_s18  ;;  %p1831_p12 = scmp.lt.s32.totalorder %s1825_s18, %s1825_s18 }
  0x1f   :  { %p1832_p13 = por %p1831_p12, %p1830_p11 }
  0x21   :  { %p1833_p0 = pnand %p1832_p13, %p1826_p10 }
  0x23   :  { %1836 = shalt.err (!%p1833_p0)
}
  0x24   :  { %s2017_s1 = smov 64   ;;  %s2018_s19 = smov 4  }
  0x25   :  { %94 = dma.hbm_to_vmem [thread:$0]  %s2435_s7, 1024, %s89_s15, [#allocation12], %s2017_s1, %s2017_s1, %s2018_s19  }
  0x26   :  { %s1845_s21 = scalar_lea.vmem %s113_s17, 1024  ;;  %p1850_p2 = scmp.lt.s32.totalorder %s113_s17, %s113_s17 }
  0x27   :  { %p1846_p1 = scmp.ne.s32.totalorder %s113_s17, %s1845_s21  ;;  %p1851_p3 = scmp.lt.s32.totalorder %s1845_s21, %s1845_s21 }
  0x29   :  { %p1852_p4 = por %p1851_p3, %p1850_p2 }
  0x2b   :  { %p1853_p5 = pnand %p1852_p4, %p1846_p1 }
  0x2d   :  { %1856 = shalt.err (!%p1853_p5)
}
  0x2e   :  { %118 = dma.hbm_to_vmem [thread:$0]  %s2437_s9, 1024, %s113_s17, [#allocation15], %s2017_s1, %s2017_s1, %s2018_s19  }
  0x2f   :  { %s2019_s24 = smov [#allocation2]   ;;  %s2020_s26 = smov [#allocation7]  }
  0x30   :  { %s28_s25 = sshll.u32 %s2019_s24, 4  ;;  %s50_s27 = sshll.u32 %s2020_s26, 4  ;;  %s29_s25 = int_to_ptr.vmem [resolvable:$true] %s28_s25  ;;  %s51_s27 = int_to_ptr.vmem [resolvable:$true] %s50_s27 }
  0x31   :  { %s1865_s7 = scalar_lea.vmem %s29_s25, 512  ;;  %p1870_p7 = scmp.lt.s32.totalorder %s29_s25, %s29_s25 }
  0x32   :  { %p1866_p6 = scmp.ne.s32.totalorder %s29_s25, %s1865_s7  ;;  %p1871_p8 = scmp.lt.s32.totalorder %s1865_s7, %s1865_s7 }
  0x34   :  { %p1872_p9 = por %p1871_p8, %p1870_p7 }
  0x36   :  { %p1873_p10 = pnand %p1872_p9, %p1866_p6 }
  0x38   :  { %1876 = shalt.err (!%p1873_p10)
}
  0x39   :  { %34 = dma.hbm_to_vmem [thread:$0]  %s2428_s0, 512, %s29_s25, [#allocation3], %s2017_s1, %s2017_s1, %s2018_s19  }
  0x3a   :  { %s1885_s9 = scalar_lea.vmem %s51_s27, 128  ;;  %p1890_p12 = scmp.lt.s32.totalorder %s51_s27, %s51_s27 }
  0x3b   :  { %p1886_p11 = scmp.ne.s32.totalorder %s51_s27, %s1885_s9  ;;  %p1891_p13 = scmp.lt.s32.totalorder %s1885_s9, %s1885_s9 }
  0x3d   :  { %p1892_p0 = por %p1891_p13, %p1890_p12 }
  0x3f   :  { %p1893_p1 = pnand %p1892_p0, %p1886_p11 }
  0x41   :  { %1896 = shalt.err (!%p1893_p1)
}
  0x42   :  { %56 = dma.hbm_to_vmem [thread:$0]  %s2430_s2, 128, %s51_s27, [#allocation6], %s2017_s1, %s2017_s1, %s2018_s19  }
  0x43   :  { %s2021_s14 = smov [#allocation10]  }
  0x44   :  { %s74_s15 = sshll.u32 %s2021_s14, 4  ;;  %s75_s15 = int_to_ptr.vmem [resolvable:$true] %s74_s15 }
  0x45   :  { %s1905_s16 = scalar_lea.vmem %s75_s15, 3072  ;;  %p1910_p3 = scmp.lt.s32.totalorder %s75_s15, %s75_s15 }
  0x46   :  { %p1906_p2 = scmp.ne.s32.totalorder %s75_s15, %s1905_s16  ;;  %p1911_p4 = scmp.lt.s32.totalorder %s1905_s16, %s1905_s16 }
  0x48   :  { %p1912_p5 = por %p1911_p4, %p1910_p3 }
  0x4a   :  { %p1913_p6 = pnand %p1912_p5, %p1906_p2 }
  0x4c   :  { %1916 = shalt.err (!%p1913_p6)
}
  0x4d   :  { %s2022_s0 = smov 192   ;;  %s2023_s17 = smov 12  }
  0x4e   :  { %80 = dma.hbm_to_vmem [thread:$0]  %s2433_s5, 3072, %s75_s15, [#allocation9], %s2022_s0, %s2022_s0, %s2023_s17  }
  0x4f   :  { %s2024_s4 = smov [#allocation13]   ;;  %s2025_s2 = smov [#allocation16]  }
  0x50   :  { %s100_s21 = sshll.u32 %s2024_s4, 4  ;;  %s124_s22 = sshll.u32 %s2025_s2, 4  ;;  %s101_s21 = int_to_ptr.vmem [resolvable:$true] %s100_s21  ;;  %s125_s22 = int_to_ptr.vmem [resolvable:$true] %s124_s22 }
  0x51   :  { %s1925_s23 = scalar_lea.vmem %s101_s21, 1024  ;;  %p1930_p8 = scmp.lt.s32.totalorder %s101_s21, %s101_s21 }
  0x52   :  { %p1926_p7 = scmp.ne.s32.totalorder %s101_s21, %s1925_s23  ;;  %p1931_p9 = scmp.lt.s32.totalorder %s1925_s23, %s1925_s23 }
  0x54   :  { %p1932_p10 = por %p1931_p9, %p1930_p8 }
  0x56   :  { %p1933_p11 = pnand %p1932_p10, %p1926_p7 }
  0x58   :  { %1936 = shalt.err (!%p1933_p11)
}
  0x59   :  { %106 = dma.hbm_to_vmem [thread:$0]  %s2436_s8, 1024, %s101_s21, [#allocation12], %s2017_s1, %s2017_s1, %s2018_s19  }
  0x5a   :  { %s1945_s5 = scalar_lea.vmem %s125_s22, 2048  ;;  %p1950_p13 = scmp.lt.s32.totalorder %s125_s22, %s125_s22 }
  0x5b   :  { %p1946_p12 = scmp.ne.s32.totalorder %s125_s22, %s1945_s5  ;;  %p1951_p0 = scmp.lt.s32.totalorder %s1945_s5, %s1945_s5 }
  0x5d   :  { %p1952_p1 = por %p1951_p0, %p1950_p13 }
  0x5f   :  { %p1953_p2 = pnand %p1952_p1, %p1946_p12 }
  0x61   :  { %1956 = shalt.err (!%p1953_p2)
}
  0x62   :  { %130 = dma.hbm_to_vmem [thread:$0]  %s2438_s10, 2048, %s125_s22, [#allocation15], %s2017_s1, %s2017_s1, %s2018_s19  }
  0x63   :  { %1989 = dma.done.wait [#allocation3], 512  }
  0x64   :  { %1990 = vsyncadd [#allocation3], 4294966784 }
  0x65   :  { %1991 = dma.done.wait [#allocation6], 192  }
  0x66   :  { %1992 = vsyncadd [#allocation6], 4294967104 }
  0x67   :  { %1993 = dma.done.wait [#allocation9], 3088  }
  0x68   :  { %1994 = vsyncadd [#allocation9], 4294964208 }
  0x69   :  { %1995 = dma.done.wait [#allocation12], 2048  }
  0x6a   :  { %1996 = vsyncadd [#allocation12], 4294965248 }
  0x6b   :  { %1997 = dma.done.wait [#allocation15], 3072  }
  0x6c   :  { %1998 = vsyncadd [#allocation15], 4294964224  ;;  %v2441_v0 = vmov 0.0   ;;  %vm2027_vm0 = vmmov 0   ;;  %v2028_v1 = vmov 0  }
  0x6d   :  { %1544 = vmatprep.subr.bf16.mxu1 %v2441_v0  ;;  %1560 = vmatprep.mubr.msk.bf16.mxu1 %vm2027_vm0, %v2441_v0  ;;  %v2146_v2 = vld [vmem:[#allocation11] sm:$0xf]  ;;  %v2148_v3 = vld [vmem:[#allocation11 + $0x4] sm:$0xf]  ;;  %v2150_v4 = vld [vmem:[#allocation11 + $0x8] sm:$0xf] }
  0x6e   :  { %378 = vmatprep.mubr.bf16.mxu0 %v2028_v1  ;;  %2444 = vst [vmem:[#allocation24_spill] sm:$0xff] %v2146_v2  ;;  %2445 = vst [vmem:[#allocation25_spill] sm:$0xff] %v2148_v3  ;;  %v2152_v5 = vld [vmem:[#allocation11 + $0xc] sm:$0xf]  ;;  %v2154_v6 = vld [vmem:[#allocation11 + $0x10] sm:$0xf] }
  0x6f   :  { %2446 = vst [vmem:[#allocation26_spill] sm:$0xff] %v2150_v4  ;;  %2447 = vst [vmem:[#allocation27_spill] sm:$0xff] %v2152_v5  ;;  %v2156_v7 = vld [vmem:[#allocation11 + $0x14] sm:$0xf]  ;;  %v2158_v8 = vld [vmem:[#allocation11 + $0x18] sm:$0xf] }
  0x70   :  { %2448 = vst [vmem:[#allocation28_spill] sm:$0xff] %v2154_v6  ;;  %2449 = vst [vmem:[#allocation29_spill] sm:$0xff] %v2156_v7  ;;  %v2160_v9 = vld [vmem:[#allocation11 + $0x1c] sm:$0xf]  ;;  %v2162_v10 = vld [vmem:[#allocation11 + $0x20] sm:$0xf] }
  0x71   :  { %2450 = vst [vmem:[#allocation30_spill] sm:$0xff] %v2158_v8  ;;  %2451 = vst [vmem:[#allocation31_spill] sm:$0xff] %v2160_v9  ;;  %v2164_v11 = vld [vmem:[#allocation11 + $0x24] sm:$0xf]  ;;  %v2166_v12 = vld [vmem:[#allocation11 + $0x28] sm:$0xf] }
  0x72   :  { %2452 = vst [vmem:[#allocation32_spill] sm:$0xff] %v2162_v10  ;;  %2453 = vst [vmem:[#allocation33_spill] sm:$0xff] %v2164_v11  ;;  %v2168_v13 = vld [vmem:[#allocation11 + $0x2c] sm:$0xf]  ;;  %v2170_v14 = vld [vmem:[#allocation11 + $0x30] sm:$0xf] }
  0x73   :  { %2454 = vst [vmem:[#allocation34_spill] sm:$0xff] %v2166_v12  ;;  %2455 = vst [vmem:[#allocation35_spill] sm:$0xff] %v2168_v13  ;;  %v2172_v15 = vld [vmem:[#allocation11 + $0x34] sm:$0xf]  ;;  %v2174_v16 = vld [vmem:[#allocation11 + $0x38] sm:$0xf] }
  0x74   :  { %2456 = vst [vmem:[#allocation36_spill] sm:$0xff] %v2170_v14  ;;  %2457 = vst [vmem:[#allocation37_spill] sm:$0xff] %v2172_v15  ;;  %v2176_v17 = vld [vmem:[#allocation11 + $0x3c] sm:$0xf]  ;;  %v2178_v18 = vld [vmem:[#allocation13] sm:$0xf] }
  0x75   :  { %2458 = vst [vmem:[#allocation38_spill] sm:$0xff] %v2174_v16  ;;  %2459 = vst [vmem:[#allocation39_spill] sm:$0xff] %v2176_v17  ;;  %v2180_v19 = vld [vmem:[#allocation13 + $0x4] sm:$0xf]  ;;  %v2182_v20 = vld [vmem:[#allocation13 + $0x8] sm:$0xf] }
  0x76   :  { %2460 = vst [vmem:[#allocation40_spill] sm:$0xff] %v2178_v18  ;;  %v2184_v21 = vld [vmem:[#allocation13 + $0xc] sm:$0xf]  ;;  %v2186_v22 = vld [vmem:[#allocation13 + $0x10] sm:$0xf] }
  0x77   :  { %v2188_v23 = vld [vmem:[#allocation13 + $0x14] sm:$0xf]  ;;  %v2190_v24 = vld [vmem:[#allocation13 + $0x18] sm:$0xf]  ;;  %v2192_v25 = vld [vmem:[#allocation13 + $0x1c] sm:$0xf] }
  0x78   :  { %v2194_v26 = vld [vmem:[#allocation13 + $0x20] sm:$0xf]  ;;  %v2196_v27 = vld [vmem:[#allocation13 + $0x24] sm:$0xf]  ;;  %v2198_v28 = vld [vmem:[#allocation13 + $0x28] sm:$0xf] }
  0x79   :  { %v2200_v29 = vld [vmem:[#allocation13 + $0x2c] sm:$0xf]  ;;  %v2202_v30 = vld [vmem:[#allocation13 + $0x30] sm:$0xf]  ;;  %v2204_v31 = vld [vmem:[#allocation13 + $0x34] sm:$0xf] }
  0x7a   :  { %v2206_v32 = vld [vmem:[#allocation13 + $0x38] sm:$0xf]  ;;  %v2208_v33 = vld [vmem:[#allocation13 + $0x3c] sm:$0xf]  ;;  %v2210_v34 = vld [vmem:[#allocation14] sm:$0xf] }
  0x7b   :  { %2461 = vst [vmem:[#allocation41_spill] sm:$0xff] %v2210_v34  ;;  %v2212_v35 = vld [vmem:[#allocation14 + $0x4] sm:$0xf]  ;;  %v2214_v36 = vld [vmem:[#allocation14 + $0x8] sm:$0xf] }
  0x7c   :  { %2462 = vst [vmem:[#allocation42_spill] sm:$0xff] %v2212_v35  ;;  %2463 = vst [vmem:[#allocation43_spill] sm:$0xff] %v2214_v36  ;;  %v2216_v37 = vld [vmem:[#allocation14 + $0xc] sm:$0xf]  ;;  %v2218_v38 = vld [vmem:[#allocation14 + $0x10] sm:$0xf] }
  0x7d   :  { %v2220_v39 = vld [vmem:[#allocation14 + $0x14] sm:$0xf]  ;;  %v2222_v40 = vld [vmem:[#allocation14 + $0x18] sm:$0xf]  ;;  %v2224_v41 = vld [vmem:[#allocation14 + $0x1c] sm:$0xf] }
  0x7e   :  { %v2226_v42 = vld [vmem:[#allocation14 + $0x20] sm:$0xf]  ;;  %v2228_v43 = vld [vmem:[#allocation14 + $0x24] sm:$0xf]  ;;  %v2230_v44 = vld [vmem:[#allocation14 + $0x28] sm:$0xf] }
  0x7f   :  { %v2232_v45 = vld [vmem:[#allocation14 + $0x2c] sm:$0xf]  ;;  %v2234_v46 = vld [vmem:[#allocation14 + $0x30] sm:$0xf]  ;;  %v2236_v47 = vld [vmem:[#allocation14 + $0x34] sm:$0xf] }
  0x80   :  { %v2238_v48 = vld [vmem:[#allocation14 + $0x38] sm:$0xf]  ;;  %v2240_v49 = vld [vmem:[#allocation14 + $0x3c] sm:$0xf]  ;;  %v1683_v52 = vld [vmem:[#allocation10 + $0xa8] ss:$12 sps:$4 sm:$0xff]  }
  0x81   :  { %v1680_v50 = vld [vmem:[#allocation10 + $0xac] ss:$12 sps:$4 sm:$0xff]   ;;  %v1682_v51 = vld [vmem:[#allocation10 + $0xb0] ss:$12 sps:$4 sm:$0xff]   ;;  %v1684_v53 = vld [vmem:[#allocation10 + $0x94] ss:$12 sps:$4 sm:$0xff]  }
  0x82   :  { %346 = vmatprep.subr.bf16.mxu0 %v1680_v50  ;;  %1545 = vmatpush3.bf16.msra.mxu1 %v1682_v51  ;;  %v1686_v54 = vld [vmem:[#allocation10 + $0x98] ss:$12 sps:$4 sm:$0xff]   ;;  %v1687_v55 = vld [vmem:[#allocation10 + $0x90] ss:$12 sps:$4 sm:$0xff]   ;;  %v1690_v57 = vld [vmem:[#allocation10 + $0x80] ss:$12 sps:$4 sm:$0xff]  }
  0x83   :  { %347 = vmatpush1.bf16.msra.mxu0 %v1683_v52  ;;  %1546 = vmatprep.subr.bf16.mxu1 %v2441_v0  ;;  %v1688_v56 = vld [vmem:[#allocation10 + $0x7c] ss:$12 sps:$4 sm:$0xff]   ;;  %v1691_v58 = vld [vmem:[#allocation10 + $0x78] ss:$12 sps:$4 sm:$0xff]   ;;  %v1695_v61 = vld [vmem:[#allocation10 + $0x60] ss:$12 sps:$4 sm:$0xff]  }
  0x84   :  { %348 = vmatprep.subr.bf16.mxu0 %v1684_v53  ;;  %v1692_v59 = vld [vmem:[#allocation10 + $0x64] ss:$12 sps:$4 sm:$0xff]   ;;  %v1694_v60 = vld [vmem:[#allocation10 + $0x68] ss:$12 sps:$4 sm:$0xff]   ;;  %v1696_v62 = vld [vmem:[#allocation10 + $0x4c] ss:$12 sps:$4 sm:$0xff]  }
  0x85   :  { %v1698_v63 = vld [vmem:[#allocation10 + $0x50] ss:$12 sps:$4 sm:$0xff]   ;;  %v1699_v1 = vld [vmem:[#allocation10 + $0x48] ss:$12 sps:$4 sm:$0xff]   ;;  %v1702_v51 = vld [vmem:[#allocation10 + $0x38] ss:$12 sps:$4 sm:$0xff]  }
  0x86   :  { %1547 = vmatpush3.bf16.msra.mxu1 %v1686_v54  ;;  %v1700_v50 = vld [vmem:[#allocation10 + $0x34] ss:$12 sps:$4 sm:$0xff]   ;;  %v1703_v52 = vld [vmem:[#allocation10 + $0x30] ss:$12 sps:$4 sm:$0xff]  }
  0x87   :  { %349 = vmatpush1.bf16.msra.mxu0 %v1687_v55  ;;  %1548 = vmatprep.subr.bf16.mxu1 %v2441_v0  ;;  %v1704_v53 = vld [vmem:[#allocation10 + $0x1c] ss:$12 sps:$4 sm:$0xff]   ;;  %v1706_v54 = vld [vmem:[#allocation10 + $0x20] ss:$12 sps:$4 sm:$0xff]   ;;  %v1707_v55 = vld [vmem:[#allocation10 + $0x18] ss:$12 sps:$4 sm:$0xff]  }
  0x88   :  { %350 = vmatprep.subr.bf16.mxu0 %v1688_v56  ;;  %v1708_v56 = vld [vmem:[#allocation10 + $0x4] ss:$12 sps:$4 sm:$0xff]  }
  0x8a   :  { %1549 = vmatpush3.bf16.msra.mxu1 %v1690_v57  ;;  %v1710_v57 = vld [vmem:[#allocation10 + $0x8] ss:$12 sps:$4 sm:$0xff]  }
  0x8b   :  { %351 = vmatpush1.bf16.msra.mxu0 %v1691_v58  ;;  %1550 = vmatprep.subr.bf16.mxu1 %v2441_v0  ;;  %v1711_v58 = vld [vmem:[#allocation10] ss:$12 sps:$4 sm:$0xff]  }
  0x8c   :  { %352 = vmatprep.subr.bf16.mxu0 %v1692_v59  ;;  %v1712_v59 = vld [vmem:[#allocation7] sm:$0xff]  }
  0x8e   :  { %1551 = vmatpush3.bf16.msra.mxu1 %v1694_v60  ;;  %v197_v60 = vlaneseq }
  0x8f   :  { %353 = vmatpush1.bf16.msra.mxu0 %v1695_v61  ;;  %1552 = vmatprep.subr.bf16.mxu1 %v2441_v0 }
  0x90   :  { %354 = vmatprep.subr.bf16.mxu0 %v1696_v62  ;;  %v198_v61 = vshrl.u32 %v197_v60, 7 }
  0x92   :  { %1553 = vmatpush3.bf16.msra.mxu1 %v1698_v63  ;;  %vm433_vm1 = vcmp.ne.s32.totalorder %v198_v61, 0  ;;  %v207_v63 = vsub.s32 2, %v198_v61 }
  0x93   :  { %355 = vmatpush1.bf16.msra.mxu0 %v1699_v1  ;;  %1554 = vmatprep.subr.bf16.mxu1 %v2441_v0  ;;  %v2250_v62 = vsel %vm433_vm1, 1.0, %v2441_v0  ;;  %v195_v1 = vld [vmem:[%s2434_s6] sm:$0x7]  ;;  %s2271_s6 = smov 0  }
  0x94   :  { %356 = vmatprep.subr.bf16.mxu0 %v1700_v50  ;;  %2464 = vst [vmem:[#allocation44_spill] sm:$0xff] %v2250_v62  ;;  %v199_v50 = vsub.s32 0, %v198_v61 }
  0x96   :  { %1555 = vmatpush3.bf16.msra.mxu1 %v1702_v51  ;;  %v203_v51 = vsub.s32 1, %v198_v61 }
  0x97   :  { %357 = vmatpush1.bf16.msra.mxu0 %v1703_v52  ;;  %1556 = vmatprep.subr.bf16.mxu1 %v2441_v0  ;;  %v208_v52 = vrot.slane %v195_v1, %v207_v63 }
  0x98   :  { %358 = vmatprep.subr.bf16.mxu0 %v1704_v53  ;;  %v200_v53 = vrot.slane %v195_v1, %v199_v50 }
  0x9a   :  { %1557 = vmatpush3.bf16.msra.mxu1 %v1706_v54 }
  0x9b   :  { %359 = vmatpush1.bf16.msra.mxu0 %v1707_v55  ;;  %1558 = vmatprep.subr.bf16.mxu1 %v2441_v0  ;;  %v204_v55 = vrot.slane %v195_v1, %v203_v51  ;;  %v2267_v1 = vmov 0.0   ;;  %v2269_v51 = vmov 0.0  }
  0x9c   :  { %360 = vmatprep.subr.bf16.mxu0 %v1708_v56 }
  0x9e   :  { %1559 = vmatpush3.bf16.msra.mxu1 %v1710_v57 }
  0x9f   :  { %361 = vmatpush1.bf16.msra.mxu0 %v1711_v58 }
  0xa1   :  { %1561 = vmatmul.mubr.bf16.vlgmr.msra.gmra.mxu1 %v1712_v59 }
  0xa2   :  { %379 = vmatmul.mubr.bf16.vlgmr.msra.gmra.mxu0 %v1712_v59 }
 0x161   :  { %v423_v54 = vpop.f32.mrf.mxu1 }
 0x162   :  { %v2255_v56 = vadd.f32 %v423_v54, %v208_v52  ;;  %v380_v57 = vpop.f32.mrf.mxu0 }
 0x163   :  { %v2257_v58 = vadd.f32 %v380_v57, %v200_v53  ;;  %v1562_v59 = vpop.f32.mrf.mxu1 }
 0x164   :  { %v382_v60 = vpop.f32.mrf.mxu0 }
 0x165   :  { %v2259_v0 = vadd.f32 %v382_v60, %v204_v55  ;;  %v426_v62 = vpop.f32.mrf.mxu1 }
 0x166   :  { %v2261_v34 = vadd.f32 %v426_v62, %v208_v52  ;;  %v384_v35 = vpop.f32.mrf.mxu0 }
 0x167   :  { %2465 = vst [vmem:[#allocation45_spill] sm:$0xff] %v2259_v0  ;;  %v2263_v36 = vadd.f32 %v384_v35, %v200_v53  ;;  %v1563_v61 = vpop.f32.mrf.mxu1 }
 0x168   :  { %v386_v63 = vpop.f32.mrf.mxu0 }
 0x169   :  { %v2265_v50 = vadd.f32 %v386_v63, %v204_v55 }
 0x16a LB: > { %v2467_v17 = vld [vmem:[#allocation39_spill] sm:$0xff]  ;;  %v2468_v16 = vld [vmem:[#allocation38_spill] sm:$0xff]  ;;  %v2029_v62 = vmov 0.0   ;;  %v2469_v15 = vld [vmem:[#allocation37_spill] sm:$0xff]  ;;  %vm2030_vm2 = vmmov 0   ;;  %v495_v61 = vpack.c.bf16 %v2003_v1, %v2007_v51  ;;  %v2031_v63 = vmov 0   ;;  %v2003_v1 = vphi %v2267_v1, %v2488_v1   ;;  %s2011_s6 = sphi %s2271_s6, %s492_s6   ;;  %v2007_v51 = vphi %v2269_v51, %v2489_v51  }
 0x16b   : > { %v1428_v35 = vcombine.low %v2468_v16, %v2467_v17  ;;  %1564 = vmatprep.subr.bf16.mxu0 %v2029_v62  ;;  %v2470_v14 = vld [vmem:[#allocation36_spill] sm:$0xff]  ;;  %1580 = vmatprep.mubr.msk.bf16.mxu0 %vm2030_vm2, %v2029_v62  ;;  %v2471_v13 = vld [vmem:[#allocation35_spill] sm:$0xff]  ;;  %v2472_v12 = vld [vmem:[#allocation34_spill] sm:$0xff]  ;;  %vm593_vm3 = vcmask 130048   ;;  %s492_s6 = sadd.s32 1, %s2011_s6  }
 0x16c   : > { %v1427_v52 = vcombine.low %v2470_v14, %v2469_v15  ;;  %v1426_v53 = vcombine.low %v2472_v12, %v2471_v13  ;;  %v2473_v11 = vld [vmem:[#allocation33_spill] sm:$0xff]  ;;  %v2474_v10 = vld [vmem:[#allocation32_spill] sm:$0xff]  ;;  %v2475_v9 = vld [vmem:[#allocation31_spill] sm:$0xff]  ;;  %629 = vmatprep.mubr.bf16.mxu1 %v2031_v63  ;;  %p489_p3 = scmp.ge.s32.totalorder %s492_s6, 3  }
 0x16d   : > { %1565 = vmatpush3.bf16.msra.mxu0 %v1428_v35  ;;  %v1425_v54 = vcombine.low %v2474_v10, %v2473_v11  ;;  %v2476_v8 = vld [vmem:[#allocation30_spill] sm:$0xff]  ;;  %v2477_v7 = vld [vmem:[#allocation29_spill] sm:$0xff]  ;;  %v2478_v6 = vld [vmem:[#allocation28_spill] sm:$0xff]  ;;  %vm1320_vm4 = vcmask (%p489_p3), 1043456   ;;  %vm1316_vm5 = vcmask (%p489_p3), 64512  }
 0x16e   : > { %v2466_v0 = vld [vmem:[#allocation45_spill] sm:$0xff]  ;;  %1566 = vmatprep.subr.bf16.mxu0 %v2029_v62  ;;  %v1424_v55 = vcombine.low %v2476_v8, %v2475_v9  ;;  %v1423_v57 = vcombine.low %v2478_v6, %v2477_v7  ;;  %v2479_v5 = vld [vmem:[#allocation27_spill] sm:$0xff]  ;;  %v2480_v4 = vld [vmem:[#allocation26_spill] sm:$0xff] }
 0x16f   : > { %v1422_v59 = vcombine.low %v2480_v4, %v2479_v5  ;;  %v2481_v3 = vld [vmem:[#allocation25_spill] sm:$0xff]  ;;  %v2482_v2 = vld [vmem:[#allocation24_spill] sm:$0xff]  ;;  %v1714_v1 = vld [vmem:[#allocation2 + $0x8] sm:$0xff]  }
 0x170   : > { %v1421_v60 = vcombine.low %v2482_v2, %v2481_v3  ;;  %v1715_v51 = vld [vmem:[#allocation2 + $0x10] sm:$0xff]  }
 0x171   : > { %1567 = vmatpush3.bf16.msra.mxu0 %v1427_v52  ;;  %v2483_v18 = vld [vmem:[#allocation40_spill] sm:$0xff] }
 0x172   : > { %1568 = vmatprep.subr.bf16.mxu0 %v2029_v62 }
 0x175   : > { %1569 = vmatpush3.bf16.msra.mxu0 %v1426_v53 }
 0x176   : > { %1570 = vmatprep.subr.bf16.mxu0 %v2029_v62 }
 0x179   : > { %1571 = vmatpush3.bf16.msra.mxu0 %v1425_v54 }
 0x17a   : > { %1572 = vmatprep.subr.bf16.mxu0 %v2029_v62 }
 0x17d   : > { %1573 = vmatpush3.bf16.msra.mxu0 %v1424_v55 }
 0x17e   : > { %1574 = vmatprep.subr.bf16.mxu0 %v2029_v62 }
 0x181   : > { %1575 = vmatpush3.bf16.msra.mxu0 %v1423_v57  ;;  %v1713_v57 = vld [vmem:[#allocation2] sm:$0xff]  }
 0x182   : > { %1576 = vmatprep.subr.bf16.mxu0 %v2029_v62 }
 0x185   : > { %1577 = vmatpush3.bf16.msra.mxu0 %v1422_v59  ;;  %v1716_v59 = vld [vmem:[#allocation2 + $0x18] sm:$0xff]  }
 0x186   : > { %1578 = vmatprep.subr.bf16.mxu0 %v2029_v62 }
 0x189   : > { %1579 = vmatpush3.bf16.msra.mxu0 %v1421_v60  ;;  %v1452_v60 = vcombine.low %v2206_v32, %v2208_v33  ;;  %v1136_v32 = vld [vmem:[%s2431_s3] sm:$0xf] (%p489_p3)  ;;  %s2032_s3 = smov (%p489_p3), [#allocation17]  }
 0x18a   : > { %1604 = vmatprep.subr.bf16.mxu0 %v2029_v62  ;;  %s1371_s29 = sshll.u32 (%p489_p3), %s2032_s3, 4  ;;  %s1372_s29 = int_to_ptr.vmem [resolvable:$true] %s1371_s29 }
 0x18b   :  { %p1962_p5 = scmp.lt.s32.totalorder (%p489_p3), %s1372_s29, %s1372_s29 }
 0x18c   : > { %1581 = vmatmul.mubr.bf16.vlgmr.msra.gmra.mxu0 %v495_v61 }
 0x18d   : > { %1620 = vmatprep.mubr.msk.bf16.mxu0 %vm2030_vm2, %v2029_v62 }
 0x24c   : > { %v578_v35 = vpop.f32.mrf.mxu0 }
 0x24e   : > { %v1582_v52 = vpop.f32.mrf.mxu0 }
 0x24f   : > { %v1448_v52 = vcombine.low %v2190_v24, %v2192_v25  ;;  %v1771_v24 = vld [vmem:[#allocation16 + $0x50] sm:$0xff] (%p489_p3)  }
 0x250   : > { %v581_v53 = vpop.f32.mrf.mxu0  ;;  %v1772_v25 = vld [vmem:[#allocation16 + $0x10] sm:$0xff] (%p489_p3)  }
 0x251   : > { %v585_v54 = vpack.c.bf16 %v581_v53, %v578_v35  ;;  %v1451_v35 = vcombine.low %v2202_v30, %v2204_v31  ;;  %v1447_v53 = vcombine.low %v2186_v22, %v2188_v23  ;;  %v1769_v22 = vld [vmem:[#allocation16 + $0x58] sm:$0xff] (%p489_p3)  }
 0x252   : > { %v1583_v55 = vpop.f32.mrf.mxu0  ;;  %v1770_v23 = vld [vmem:[#allocation16 + $0x18] sm:$0xff] (%p489_p3)  }
 0x253   : > { %611 = vmatprep.subr.bf16.mxu1 %v585_v54  ;;  %v1445_v55 = vcombine.low %v2483_v18, %v2180_v19  ;;  %v1766_v19 = vld [vmem:[#allocation16 + $0x28] sm:$0xff] (%p489_p3)  }
 0x254   : > { %612 = vmatpush1.bf16.msra.mxu1 %v495_v61 }
 0x255   : > { %685 = vmatprep.subr.bf16.mxu1 %v585_v54 }
 0x257   : > { %1430 = vmatmul.mubr.msk.bf16.vlgmr.msra.gmra.mxu1 %vm593_vm3, %v1713_v57  ;;  %v1462_v57 = vcombine.low %v2238_v48, %v2240_v49 }
 0x258   : > { %686 = vmatpush1.bf16.msra.mxu1 %v495_v61  ;;  %703 = vmatprep.mubr.bf16.mxu1 %v2031_v63 }
 0x259   : > { %759 = vmatprep.subr.bf16.mxu1 %v585_v54  ;;  %1605 = vmatpush3.bf16.msra.mxu0 %v1462_v57 }
 0x25a   : > { %1606 = vmatprep.subr.bf16.mxu0 %v2029_v62 }
 0x25f   : > { %1434 = vmatmul.mubr.msk.bf16.vlgmr.msra.gmra.mxu1 %vm593_vm3, %v1714_v1  ;;  %v1461_v1 = vcombine.low %v2234_v46, %v2236_v47  ;;  %v1314_v47 = vld [vmem:[#allocation8] sm:$0x1] (%p489_p3) }
 0x260   : > { %760 = vmatpush1.bf16.msra.mxu1 %v495_v61  ;;  %777 = vmatprep.mubr.bf16.mxu1 %v2031_v63 }
 0x261   : > { %833 = vmatprep.subr.bf16.mxu1 %v585_v54  ;;  %v1446_v54 = vcombine.low %v2182_v20, %v2184_v21  ;;  %1607 = vmatpush3.bf16.msra.mxu0 %v1461_v1  ;;  %v1767_v20 = vld [vmem:[#allocation16 + $0x60] sm:$0xff] (%p489_p3)  }
 0x262   : > { %1608 = vmatprep.subr.bf16.mxu0 %v2029_v62  ;;  %v1768_v21 = vld [vmem:[#allocation16 + $0x20] sm:$0xff] (%p489_p3)  }
 0x267   : > { %1438 = vmatmul.mubr.msk.bf16.vlgmr.msra.gmra.mxu1 %vm593_vm3, %v1715_v51  ;;  %v1460_v51 = vcombine.low %v2230_v44, %v2232_v45 }
 0x268   : > { %834 = vmatpush1.bf16.msra.mxu1 %v495_v61  ;;  %851 = vmatprep.mubr.bf16.mxu1 %v2031_v63  ;;  %v1450_v61 = vcombine.low %v2198_v28, %v2200_v29  ;;  %v1449_v63 = vcombine.low %v2194_v26, %v2196_v27  ;;  %v1773_v26 = vld [vmem:[#allocation16 + $0x48] sm:$0xff] (%p489_p3)   ;;  %v1775_v28 = vld [vmem:[#allocation16 + $0x40] sm:$0xff] (%p489_p3)  }
 0x269   : > { %1584 = vmatprep.subr.bf16.mxu1 %v2029_v62  ;;  %1609 = vmatpush3.bf16.msra.mxu0 %v1460_v51  ;;  %v1774_v27 = vld [vmem:[#allocation16 + $0x8] sm:$0xff] (%p489_p3)   ;;  %v1776_v29 = vld [vmem:[#allocation16] sm:$0xff] (%p489_p3)  }
 0x26a   : > { %1610 = vmatprep.subr.bf16.mxu0 %v2029_v62 }
 0x26f   : > { %1442 = vmatmul.mubr.msk.bf16.vlgmr.msra.gmra.mxu1 %vm593_vm3, %v1716_v59  ;;  %v1459_v59 = vcombine.low %v2226_v42, %v2228_v43 }
 0x270   : > { %1600 = vmatprep.mubr.msk.bf16.mxu1 %vm2030_vm2, %v2029_v62  ;;  %1585 = vmatpush3.bf16.msra.mxu1 %v1452_v60  ;;  %v1458_v60 = vcombine.low %v2222_v40, %v2224_v41 }
 0x271   : > { %1586 = vmatprep.subr.bf16.mxu1 %v2029_v62  ;;  %1611 = vmatpush3.bf16.msra.mxu0 %v1459_v59 }
 0x272   : > { %1612 = vmatprep.subr.bf16.mxu0 %v2029_v62 }
 0x274   : > { %1587 = vmatpush3.bf16.msra.mxu1 %v1451_v35  ;;  %v1457_v35 = vcombine.low %v2218_v38, %v2220_v39  ;;  %v1464_v38 = vld [vmem:[%s2439_s11] ss:$0 sm:$0xff] (%p489_p3)  ;;  %s1957_s11 = scalar_lea.vmem (%p489_p3), %s1372_s29, 32 }
 0x275   : > { %1588 = vmatprep.subr.bf16.mxu1 %v2029_v62  ;;  %1613 = vmatpush3.bf16.msra.mxu0 %v1458_v60  ;;  %p1958_p4 = scmp.ne.s32.totalorder (%p489_p3), %s1372_s29, %s1957_s11  ;;  %p1963_p6 = scmp.lt.s32.totalorder (%p489_p3), %s1957_s11, %s1957_s11 }
 0x276   : > { %1614 = vmatprep.subr.bf16.mxu0 %v2029_v62 }
 0x277   :  { %p1964_p7 = por (%p489_p3), %p1963_p6, %p1962_p5 }
 0x278   : > { %1589 = vmatpush3.bf16.msra.mxu1 %v1450_v61  ;;  %v2484_v61 = vld [vmem:[#allocation43_spill] sm:$0xff] }
 0x279   : > { %1590 = vmatprep.subr.bf16.mxu1 %v2029_v62  ;;  %1615 = vmatpush3.bf16.msra.mxu0 %v1457_v35  ;;  %p1965_p8 = pnand (%p489_p3), %p1964_p7, %p1958_p4 }
 0x27a   : > { %1616 = vmatprep.subr.bf16.mxu0 %v2029_v62 }
 0x27c   : > { %1591 = vmatpush3.bf16.msra.mxu1 %v1449_v63  ;;  %v1456_v63 = vcombine.low %v2484_v61, %v2216_v37 }
 0x27d   : > { %1592 = vmatprep.subr.bf16.mxu1 %v2029_v62 }
 0x27e   : > { %1617 = vmatpush3.bf16.msra.mxu0 %v1456_v63 }
 0x27f   : > { %1618 = vmatprep.subr.bf16.mxu0 %v2029_v62 }
 0x280   : > { %1593 = vmatpush3.bf16.msra.mxu1 %v1448_v52  ;;  %v2485_v52 = vld [vmem:[#allocation42_spill] sm:$0xff] }
 0x281   : > { %1594 = vmatprep.subr.bf16.mxu1 %v2029_v62 }
 0x284   : > { %1595 = vmatpush3.bf16.msra.mxu1 %v1447_v53  ;;  %v2486_v53 = vld [vmem:[#allocation41_spill] sm:$0xff] }
 0x285   : > { %1596 = vmatprep.subr.bf16.mxu1 %v2029_v62 }
 0x288   : > { %1597 = vmatpush3.bf16.msra.mxu1 %v1446_v54  ;;  %v1455_v54 = vcombine.low %v2486_v53, %v2485_v52 }
 0x289   : > { %1598 = vmatprep.subr.bf16.mxu1 %v2029_v62 }
 0x28a   : > { %1619 = vmatpush3.bf16.msra.mxu0 %v1455_v54 }
 0x28c   : > { %1599 = vmatpush3.bf16.msra.mxu1 %v1445_v55 }
 0x317   : > { %v2360_v55 = vpop.f32.mrf.mxu1 }
 0x319   : > { %v633_v57 = vpop.f32.mrf.mxu1 }
 0x31a   : > { %v640_v61 = vadd.f32 %v633_v57, %v2466_v0 }
 0x31b   : > { %v2362_v1 = vpop.f32.mrf.mxu1 }
 0x31c   : > { %v1431_v54 = vmul.f32 -1.442695, %v640_v61 }
 0x31d   : > { %v637_v51 = vpop.f32.mrf.mxu1 }
 0x31e   : > { %v641_v63 = vadd.f32 %v637_v51, %v2265_v50  ;;  %1717 = vpow2.f32 %v1431_v54 }
 0x31f   : > { %v2364_v59 = vpop.f32.mrf.mxu1 }
 0x320   : > { %v1432_v3 = vmul.f32 -1.442695, %v641_v63  ;;  %v728_v61 = vadd.f32 %v2364_v59, %v2360_v55 }
 0x321   : > { %v707_v60 = vpop.f32.mrf.mxu1 }
 0x322   : > { %v714_v52 = vadd.f32 %v707_v60, %v2466_v0  ;;  %1719 = vpow2.f32 %v1432_v3 }
 0x323   : > { %v2366_v35 = vpop.f32.mrf.mxu1 }
 0x324   : > { %v1435_v5 = vmul.f32 -1.442695, %v714_v52  ;;  %v729_v63 = vadd.f32 %v2366_v35, %v2362_v1 }
 0x325   : > { %v711_v2 = vpop.f32.mrf.mxu1 }
 0x326   : > { %v715_v62 = vadd.f32 %v711_v2, %v2265_v50  ;;  %1721 = vpow2.f32 %v1435_v5 }
 0x327   : > { %v2372_v53 = vpop.f32.mrf.mxu1 }
 0x328   : > { %v1436_v7 = vmul.f32 -1.442695, %v715_v62  ;;  %v802_v62 = vadd.f32 %v2372_v53, %v728_v61 }
 0x329   : > { %v781_v4 = vpop.f32.mrf.mxu1 }
 0x32a   : > { %v788_v6 = vadd.f32 %v781_v4, %v2466_v0  ;;  %1723 = vpow2.f32 %v1436_v7 }
 0x32b   : > { %v2375_v8 = vpop.f32.mrf.mxu1  ;;  %v1718_v61 = vpop.eup %1717 }
 0x32c   : > { %v1439_v57 = vmul.f32 -1.442695, %v788_v6  ;;  %v803_v6 = vadd.f32 %v2375_v8, %v729_v63 }
 0x32d   : > { %v785_v51 = vpop.f32.mrf.mxu1 }
 0x32e   : > { %v789_v60 = vadd.f32 %v785_v51, %v2265_v50  ;;  %1725 = vpow2.f32 %v1439_v57 }
 0x32f   : > { %v853_v2 = vpop.f32.mrf.mxu1  ;;  %v1720_v63 = vpop.eup %1719 }
 0x330   : > { %v1440_v4 = vmul.f32 -1.442695, %v789_v60  ;;  %v2385_v54 = vadd.f32 %v853_v2, %v802_v62 }
 0x331   : > { %v855_v52 = vpop.f32.mrf.mxu1 }
 0x332   : > { %v862_v3 = vadd.f32 %v855_v52, %v2466_v0  ;;  %1727 = vpow2.f32 %v1440_v4  ;;  %v648_v52 = vadd.f32 1.0, %v1718_v61  ;;  %v649_v0 = vadd.f32 1.0, %v1720_v63 }
 0x333   : > { %v857_v5 = vpop.f32.mrf.mxu1  ;;  %v1722_v11 = vpop.eup %1721 }
 0x334   : > { %v1443_v7 = vmul.f32 -1.442695, %v862_v3  ;;  %v2387_v51 = vadd.f32 %v857_v5, %v803_v6  ;;  %v722_v3 = vadd.f32 1.0, %v1722_v11 }
 0x335   : > { %v859_v9 = vpop.f32.mrf.mxu1 }
 0x336   : > { %v882_v10 = vpack.c.bf16 %v2387_v51, %v2385_v54  ;;  %v863_v57 = vadd.f32 %v859_v9, %v2265_v50  ;;  %1729 = vpow2.f32 %v1443_v7 }
 0x337   : > { %v1724_v4 = vpop.eup %1723 }
 0x338   : > { %v1444_v60 = vmul.f32 -1.442695, %v863_v57  ;;  %1601 = vmatmul.mubr.bf16.vlgmr.msra.gmra.mxu1 %v882_v10  ;;  %v723_v6 = vadd.f32 1.0, %v1724_v4 }
 0x33a   : > { %1731 = vpow2.f32 %v1444_v60 }
 0x33b   : > { %v1726_v62 = vpop.eup %1725  ;;  %1733 = vrcp.f32 %v648_v52 }
 0x33c   : > { %v796_v13 = vadd.f32 1.0, %v1726_v62  ;;  %1735 = vrcp.f32 %v649_v0 }
 0x33d   : > { %1737 = vrcp.f32 %v722_v3 }
 0x33e   : > { %1739 = vrcp.f32 %v723_v6 }
 0x33f   : > { %v1728_v12 = vpop.eup %1727  ;;  %1741 = vrcp.f32 %v796_v13 }
 0x340   : > { %v797_v14 = vadd.f32 1.0, %v1728_v12 }
 0x342   : > { %1743 = vrcp.f32 %v797_v14 }
 0x343   : > { %v1730_v9 = vpop.eup %1729 }
 0x344   : > { %v870_v10 = vadd.f32 1.0, %v1730_v9 }
 0x346   : > { %1745 = vrcp.f32 %v870_v10 }
 0x347   : > { %v1732_v7 = vpop.eup %1731 }
 0x348   : > { %v871_v57 = vadd.f32 1.0, %v1732_v7  ;;  %v1734_v60 = vpop.eup %1733 }
 0x349   : > { %v1736_v61 = vpop.eup %1735  ;;  %v656_v62 = vmul.f32 %v1734_v60, %v2360_v55 }
 0x34a   : > { %1747 = vrcp.f32 %v871_v57  ;;  %v1738_v63 = vpop.eup %1737  ;;  %v657_v13 = vmul.f32 %v1736_v61, %v2362_v1 }
 0x34b   : > { %v1740_v11 = vpop.eup %1739  ;;  %v730_v52 = vmul.f32 %v1738_v63, %v2364_v59 }
 0x34c   : > { %v1742_v4 = vpop.eup %1741  ;;  %v731_v0 = vmul.f32 %v1740_v11, %v2366_v35 }
 0x34d   : > { %v804_v14 = vmul.f32 %v1742_v4, %v2372_v53  ;;  %v732_v6 = vadd.f32 %v730_v52, %v656_v62 }
 0x34e   : > { %v733_v9 = vadd.f32 %v731_v0, %v657_v13 }
 0x34f   : > { %v1744_v15 = vpop.eup %1743  ;;  %v806_v57 = vadd.f32 %v804_v14, %v732_v6 }
 0x350   : > { %v805_v3 = vmul.f32 %v1744_v15, %v2375_v8 }
 0x352   : > { %v807_v16 = vadd.f32 %v805_v3, %v733_v9 }
 0x353   : > { %v1746_v12 = vpop.eup %1745 }
 0x354   : > { %v878_v10 = vmul.f32 %v1746_v12, %v853_v2 }
 0x356   : > { %v880_v18 = vadd.f32 %v878_v10, %v806_v57 }
 0x357   : > { %v1748_v7 = vpop.eup %1747 }
 0x358   : > { %v879_v17 = vmul.f32 %v1748_v7, %v857_v5 }
 0x35a   : > { %v881_v59 = vadd.f32 %v879_v17, %v807_v16 }
 0x35c   : > { %v986_v63 = vpack.c.bf16 %v881_v59, %v880_v18  ;;  %v2487_v59 = vld [vmem:[#allocation44_spill] sm:$0xff] }
 0x35e   : > { %1621 = vmatmul.mubr.bf16.vlgmr.msra.gmra.mxu0 %v986_v63 }
 0x3f8   : > { %v965_v35 = vpop.f32.mrf.mxu1 }
 0x3f9   : > { %v972_v1 = vadd.f32 %v965_v35, %v2257_v58 }
 0x3fa   : > { %v1602_v11 = vpop.f32.mrf.mxu1 }
 0x3fb   : > { %v1453_v53 = vmul.f32 -1.442695, %v972_v1 }
 0x3fc   : > { %v968_v55 = vpop.f32.mrf.mxu1 }
 0x3fd   : > { %v973_v8 = vadd.f32 %v968_v55, %v2263_v36  ;;  %1749 = vpow2.f32 %v1453_v53  ;;  %v1090_v53 = vld [vmem:[#allocation5] sm:$0xf] (%p489_p3) }
 0x3fe   : > { %v1603_v60 = vpop.f32.mrf.mxu1 }
 0x3ff   : > { %v1454_v15 = vmul.f32 -1.442695, %v973_v8  ;;  %v1762_v8 = vld [vmem:[#allocation16 + $0x38] sm:$0xff] (%p489_p3)  }
 0x401   : > { %1751 = vpow2.f32 %v1454_v15  ;;  %v1763_v15 = vld [vmem:[#allocation16 + $0x70] sm:$0xff] (%p489_p3)  }
 0x40a   : > { %v1750_v2 = vpop.eup %1749 }
 0x40b   : > { %v980_v61 = vadd.f32 1.0, %v1750_v2  ;;  %v1764_v2 = vld [vmem:[#allocation16 + $0x30] sm:$0xff] (%p489_p3)  }
 0x40d   : > { %1753 = vrcp.f32 %v980_v61  ;;  %v1765_v61 = vld [vmem:[#allocation16 + $0x68] sm:$0xff] (%p489_p3)  }
 0x40e   : > { %v1752_v4 = vpop.eup %1751 }
 0x40f   : > { %v981_v5 = vadd.f32 1.0, %v1752_v4 }
 0x411   : > { %1755 = vrcp.f32 %v981_v5 }
 0x41a   : > { %v1754_v62 = vpop.eup %1753 }
 0x41b   : > { %v1080_v13 = vsub.f32 1.0, %v1754_v62 }
 0x41d   : > { %v1082_v9 = vmul.f32 %v1080_v13, %v2385_v54  ;;  %v2490_v54 = vmov (%p489_p3), 0.0  }
 0x41e   : > { %v1069_v16 = vpop.f32.mrf.mxu0  ;;  %v1756_v14 = vpop.eup %1755  ;;  %1624 = vmatprep.subr.bf16.mxu0 (%p489_p3), %v2490_v54  ;;  %1626 = vmatprep.mubr.msk.bf16.mxu0 (%p489_p3), %vm2027_vm0, %v2490_v54 }
 0x41f   : > { %v1076_v17 = vadd.f32 %v1069_v16, %v2255_v56  ;;  %v1081_v6 = vsub.f32 1.0, %v1756_v14 }
 0x420   : > { %v1622_v18 = vpop.f32.mrf.mxu0 }
 0x421   : > { %1757 = vtanh.f32 %v1076_v17  ;;  %v1083_v35 = vmul.f32 %v1081_v6, %v2387_v51 }
 0x422   : > { %v1072_v52 = vpop.f32.mrf.mxu0 }
 0x423   : > { %v1077_v0 = vadd.f32 %v1072_v52, %v2261_v34 }
 0x424   : > { %v1623_v12 = vpop.f32.mrf.mxu0 }
 0x425   : > { %1759 = vtanh.f32 %v1077_v0 }
 0x42e   : > { %v1758_v3 = vpop.eup %1757 }
 0x42f   : > { %v1084_v10 = vmul.f32 %v1758_v3, %v1754_v62 }
 0x431   : > { %v1086_v7 = vadd.f32 %v1084_v10, %v1082_v9 }
 0x432   : > { %v1760_v57 = vpop.eup %1759 }
 0x433   : > { %v1088_v63 = vmul.f32 %v2487_v59, %v1086_v7   ;;  %v1085_v11 = vmul.f32 %v1760_v57, %v1756_v14  ;;  %491 = sbr.rel (!%p489_p3) target bundleno = 362 (0x16a), region = 114 }
 0x435   : > { %v1087_v55 = vadd.f32 %v1085_v11, %v1083_v35   ;;  %v2489_v51 = vmov %v1088_v63 }
 0x436   :  { %v1761_v51 = vld [vmem:[#allocation16 + $0x78] sm:$0xff] (%p489_p3)  }
 0x437   : > { %v2488_v1 = vmov %v1087_v55  ;;  %v1091_v60 = vpack.c.bf16 (%p489_p3), %v1087_v55, %v1088_v63  ;;  %1520 = vmatprep.subr.bf16.mxu1 (%p489_p3), %v1761_v51 }
 0x438   :  { %1521 = vmatpush3.bf16.msra.mxu1 %v1762_v8 }
 0x439   :  { %1625 = vmatpush3.bf16.msra.mxu0 %v1091_v60  ;;  %1522 = vmatprep.subr.bf16.mxu1 %v1763_v15 }
 0x43a   :  { %1630 = vmatprep.subr.bf16.mxu0 %v2490_v54 }
 0x43c   :  { %1627 = vmatmul.mubr.msk.bf16.vlgmr.msra.gmra.mxu0 %vm593_vm3, %v1090_v53  ;;  %1523 = vmatpush3.bf16.msra.mxu1 %v1764_v2 }
 0x43d   :  { %1632 = vmatprep.mubr.msk.bf16.mxu0 %vm2027_vm0, %v2490_v54  ;;  %1524 = vmatprep.subr.bf16.mxu1 %v1765_v61 }
 0x440   :  { %1525 = vmatpush3.bf16.msra.mxu1 %v1766_v19 }
 0x441   :  { %1526 = vmatprep.subr.bf16.mxu1 %v1767_v20 }
 0x444   :  { %1527 = vmatpush3.bf16.msra.mxu1 %v1768_v21 }
 0x445   :  { %1528 = vmatprep.subr.bf16.mxu1 %v1769_v22 }
 0x448   :  { %1529 = vmatpush3.bf16.msra.mxu1 %v1770_v23 }
 0x449   :  { %1530 = vmatprep.subr.bf16.mxu1 %v1771_v24 }
 0x44c   :  { %1531 = vmatpush3.bf16.msra.mxu1 %v1772_v25 }
 0x44d   :  { %1532 = vmatprep.subr.bf16.mxu1 %v1773_v26 }
 0x450   :  { %1533 = vmatpush3.bf16.msra.mxu1 %v1774_v27 }
 0x451   :  { %1534 = vmatprep.subr.bf16.mxu1 %v1775_v28 }
 0x454   :  { %1535 = vmatpush3.bf16.msra.mxu1 %v1776_v29 }
 0x4fc   :  { %v1130_v30 = vpop.f32.mrf.mxu0 }
 0x4fd   :  { %v1137_v31 = vpack.c.bf16 %v1130_v30, %v1130_v30 }
 0x4fe   :  { %v1628_v33 = vpop.f32.mrf.mxu0 }
 0x4ff   :  { %1305 = vmatprep.mubr.bf16.mxu1 %v1137_v31 }
 0x500   :  { %v1133_v34 = vpop.f32.mrf.mxu0  ;;  %1306 = vmatmul.mubr.bf16.vlgmr.msra.gmra.mxu1 %v1136_v32 }
 0x502   :  { %v1629_v36 = vpop.f32.mrf.mxu0 }
 0x5c0   :  { %v1536_v37 = vpop.f32.mrf.mxu1 }
 0x5c2   :  { %v1537_v39 = vpop.f32.mrf.mxu1 }
 0x5c3   :  { %v1538_v40 = vadd.f32 %v1537_v39, %v1536_v37 }
 0x5c4   :  { %v1539_v41 = vpop.f32.mrf.mxu1 }
 0x5c5   :  { %v1308_v42 = vadd.f32 %v1538_v40, %v1464_v38 }
 0x5c6   :  { %v1540_v43 = vpop.f32.mrf.mxu1 }
 0x5c7   :  { %v1313_v44 = vmax.f32 %v1308_v42, 0.0 }
 0x5c9   :  { %v1315_v45 = vpack.c.bf16 %v1313_v44, %v1313_v44 }
 0x5cb   :  { %v1322_v46 = vsel %vm1320_vm4, %v1315_v45, 0 }
 0x5cc   :  { %1631 = vmatpush3.bf16.msra.mxu0 %v1322_v46 }
 0x5cf   :  { %1633 = vmatmul.mubr.msk.bf16.vlgmr.msra.gmra.mxu0 %vm1316_vm5, %v1314_v47 }
 0x68f   :  { %v1358_v48 = vpop.f32.mrf.mxu0 }
 0x690   :  { %1364 = vst [vmem:[#allocation17] sm:$0x3] %v1358_v48 }
 0x691   :  { %v1634_v49 = vpop.f32.mrf.mxu0 }
 0x692   :  { %1968 = shalt.err (!%p1965_p8)
}
 0x693   :  { %1374 = dma.vmem_to_hbm [thread:$0]  %s1372_s29, 32, %s2440_s12, [#allocation4]   ;;  %v1361_v56 = vpop.f32.mrf.mxu0 }
 0x695   :  { %v1635_v58 = vpop.f32.mrf.mxu0 }
 0x696   :  { %1999 = dma.done.wait [#allocation4], 32  }
 0x697   :  { %2000 = vsyncadd [#allocation4], 4294967264 }
 0x698   :  { %1378 = vsyncpa [#allocation3], 1 }
 0x699   :  { %1379 = vsyncpa [#allocation6], 1 }
 0x69a   :  { %1380 = vsyncpa [#allocation9], 1 }
 0x69b   :  { %1381 = vsyncpa [#allocation12], 1 }
 0x69c   :  { %1382 = vsyncpa [#allocation15], 1 }
 0x69d   :  { %1383 = vsyncpa [#allocation4], 1 }

</bundles_post_ra>
